<compile_context>
chip_gen: v5e
topology: v5e:2x2
jax: 0.10.0
libtpu: 0.0.40
codegen_flags: <defaults>
</compile_context>

<pallas_src>
import jax
import jax.numpy as jnp
from jax.experimental import pallas as pl
from jax.experimental.pallas import tpu as pltpu

LN_EPS = 1e-5  # nn.LayerNorm default


def _patch_merge_kernel(x_ref, we_ref, wo_ref, bias_ref, o_ref):
    """One row-tile: 2x2 gather + LayerNorm(4C) + Linear(4C->2C).

    x_ref:    (TR, 2, Wo, 2C)  dim1 = h-parity. even-h slab = [x0 | x2],
                               odd-h slab = [x1 | x3] (torch concat order).
    we_ref:   (2C, 2C_out)     gamma-folded weight rows for [x0, x2]
    wo_ref:   (2C, 2C_out)     gamma-folded weight rows for [x1, x3]
    bias_ref: (1, 2C_out)      beta @ W^T
    o_ref:    (TR*Wo, 2C_out)  flattened merged-token rows (lane-dense store)
    """
    tr, _, wo, c2 = x_ref.shape
    tm = tr * wo
    inv_4c = 1.0 / (2 * c2)

    # Slice the two h-parity slabs and flatten tokens (free view when Wo%8==0).
    e_raw = x_ref[:, 0, :, :].reshape(tm, c2)   # [x0 | x2]
    o_raw = x_ref[:, 1, :, :].reshape(tm, c2)   # [x1 | x3]
    e = e_raw.astype(jnp.float32)
    o = o_raw.astype(jnp.float32)

    # LayerNorm stats over the full 4C group: two-pass, biased variance, f32
    # (matches PyTorch nn.LayerNorm exactly).
    mean = (jnp.sum(e, axis=-1, keepdims=True)
            + jnp.sum(o, axis=-1, keepdims=True)) * inv_4c
    ec = e - mean
    oc = o - mean
    var = (jnp.sum(ec * ec, axis=-1, keepdims=True)
           + jnp.sum(oc * oc, axis=-1, keepdims=True)) * inv_4c
    inv = jax.lax.rsqrt(var + LN_EPS)

    # out = xhat @ (gamma*W^T) + beta @ W^T, split over the two slabs (MXU).
    # The per-token 1/sigma is applied AFTER the matmuls (mathematically
    # identical, half the normalize VPU work).  MXU operand dtype follows the
    # prepared weight dtype (f32 here; bf16 if prepared with mxu_dtype=bf16).
    mdt = we_ref.dtype
    acc = jnp.dot(ec.astype(mdt), we_ref[...], preferred_element_type=jnp.float32)
    acc = acc + jnp.dot(oc.astype(mdt), wo_ref[...], preferred_element_type=jnp.float32)
    acc = acc * inv + bias_ref[...]
    o_ref[...] = acc.astype(o_ref.dtype)   # already (tm, 2C_out): no reshape


def _vmem_limit_bytes():
    """~half of physical VMEM: 64 MiB on v5e/v6e (128 MiB), ~32 MiB on v7x (64 MiB)."""
    try:
        cap = int(getattr(pltpu.get_tpu_info(), "vmem_capacity_bytes", 0) or 0)
        if cap > 0:
            return int(min(64 * 1024 * 1024, cap // 2))
    except Exception:
        pass
    return 32 * 1024 * 1024


def _choose_row_tile(nr, wo, c, in_bytes, out_bytes, vmem_limit):
    """Byte-based row tile: fill ~60% of the scoped VMEM limit per grid step."""
    # Per merged-output-row VMEM footprint:
    #   x block   : 2 buffers * (2 parities * Wo * 2C) * in_bytes
    #   out block : 2 buffers * (Wo * 2C) * out_bytes
    #   f32 temps : e/o/ec/oc (4*Wo*2C) + acc (Wo*2C) + stats (~4*Wo)
    per_row = (2 * 2 * wo * 2 * c * in_bytes
               + 2 * wo * 2 * c * out_bytes
               + (4 * wo * 2 * c + wo * 2 * c + 4 * wo) * 4)
    budget = int(vmem_limit * 0.6)
    tr = max(1, budget // max(per_row, 1))
    tr = min(tr, nr)
    # Keep >= 4 grid steps on large problems so the single "parallel" axis can
    # actually feed both TensorCores on v7x megacore.
    if nr >= 32:
        tr = min(tr, pl.cdiv(nr, 4))
    if tr < nr:
        # Multiple of 8 so the flattened (tr*Wo, 2C_out) output block keeps a
        # sublane-aligned first dim for any Wo.
        tr = max(8, (tr // 8) * 8)
        tr = min(tr, nr)
    return tr


def prepare_patch_merging_params(gamma, beta, weight, *, mxu_dtype=None):
    """Fold the LayerNorm affine into the reduction weight.  Call ONCE at model
    init (outside the jitted forward) -- these are tiny (4C x 2C) tensors.

    gamma, beta: (4C,)   weight: (2C, 4C) torch-style nn.Linear (out, in).
    Returns (w_even, w_odd, bias):
      w_even (2C, 2C): gamma-folded W^T rows for the even-h slab [x0 | x2]
      w_odd  (2C, 2C): gamma-folded W^T rows for the odd-h  slab [x1 | x3]
      bias   (1, 2C) : beta @ W^T   (kept f32)
    Pass mxu_dtype=jnp.bfloat16 for bf16 MXU operands on bf16 models.
    """
    c = gamma.shape[0] // 4
    f32 = jnp.float32
    wt = weight.astype(f32).T                         # (4C, 2C_out)
    wg = gamma.astype(f32)[:, None] * wt              # gamma folded in
    w_even = jnp.concatenate([wg[0:c], wg[2 * c:3 * c]], axis=0)     # [x0, x2]
    w_odd = jnp.concatenate([wg[c:2 * c], wg[3 * c:4 * c]], axis=0)  # [x1, x3]
    bias = (beta.astype(f32) @ wt).reshape(1, -1)     # beta folded in
    if mxu_dtype is not None:
        w_even = w_even.astype(mxu_dtype)
        w_odd = w_odd.astype(mxu_dtype)
    return w_even, w_odd, bias


def patch_merging_2d(x, w_even, w_odd, bias):
    """x: (B, H, W, C) -> (B, H//2, W//2, 2C).  Params from prepare_patch_merging_params."""
    B, H, W, C = x.shape
    Ho, Wo = H // 2, W // 2
    if (H % 2) or (W % 2):
        # SHAPE_FIX crop of the torch module (rare path; costs one copy).
        # TODO(synk): the torch module also prints a warning here; omitted.
        x = x[:, :2 * Ho, :2 * Wo, :]

    c2 = 2 * C                 # channels per h-parity slab
    c_out = bias.shape[-1]     # 2C
    nr = B * Ho                # merged output rows

    # Free row-major HBM views (no copies):
    #   in : (B, 2Ho, 2Wo, C)    -> (B*Ho, 2, Wo, 2C)
    #   out: written as (B*Ho*Wo, 2C) -> reshaped back to (B, Ho, Wo, 2C)
    xr = x.reshape(nr, 2, Wo, c2)

    vmem_limit = _vmem_limit_bytes()
    tr = _choose_row_tile(nr, Wo, C, x.dtype.itemsize, x.dtype.itemsize, vmem_limit)
    grid = (pl.cdiv(nr, tr),)   # cdiv grid: partial last block is masked, never tr=1

    out_flat = pl.pallas_call(
        _patch_merge_kernel,
        out_shape=jax.ShapeDtypeStruct((nr * Wo, c_out), x.dtype),
        grid_spec=pltpu.PrefetchScalarGridSpec(
            num_scalar_prefetch=0,
            grid=grid,
            in_specs=[
                # Last two block dims equal full array dims -> (8,128) rule ok.
                pl.BlockSpec((tr, 2, Wo, c2), lambda i: (i, 0, 0, 0)),  # x rows
                pl.BlockSpec((c2, c_out), lambda i: (0, 0)),            # W_even
                pl.BlockSpec((c2, c_out), lambda i: (0, 0)),            # W_odd
                pl.BlockSpec((1, c_out), lambda i: (0, 0)),             # bias
            ],
            # Flattened lane-dense output slab: no in-kernel output reshape.
            out_specs=pl.BlockSpec((tr * Wo, c_out), lambda i: (i, 0)),
        ),
        compiler_params=pltpu.CompilerParams(
            dimension_semantics=("parallel",),   # megacore can shard row tiles
            vmem_limit_bytes=vmem_limit,
        ),
    )(xr, w_even, w_odd, bias)

    return out_flat.reshape(B, Ho, Wo, c_out)


def _reference(x, gamma, beta, weight):
    """Pure-JAX reference reproducing the torch forward exactly."""
    B, H, W, C = x.shape
    Ho, Wo = H // 2, W // 2
    x0 = x[:, 0::2, 0::2, :][:, :Ho, :Wo, :]
    x1 = x[:, 1::2, 0::2, :][:, :Ho, :Wo, :]
    x2 = x[:, 0::2, 1::2, :][:, :Ho, :Wo, :]
    x3 = x[:, 1::2, 1::2, :][:, :Ho, :Wo, :]
    m = jnp.concatenate([x0, x1, x2, x3], axis=-1).astype(jnp.float32)
    mean = jnp.mean(m, axis=-1, keepdims=True)
    var = jnp.mean((m - mean) ** 2, axis=-1, keepdims=True)
    xhat = (m - mean) * jax.lax.rsqrt(var + LN_EPS)
    y = xhat * gamma + beta
    return (y @ weight.T.astype(jnp.float32)).astype(x.dtype)


if __name__ == "__main__":
    # Small shapes consistent with the module: B=2, H=W=16, dim(C)=4.
    B, H, W, C = 2, 16, 16, 4
    key = jax.random.PRNGKey(0)
    kx, kg, kb, kw = jax.random.split(key, 4)

    x = jax.random.normal(kx, (B, H, W, C), dtype=jnp.float32)
    # Parameters (shapes from __init__):
    #   norm = LayerNorm(4*dim)                -> gamma, beta: (4C,)
    #   reduction = Linear(4C, 2C, bias=False) -> weight: (2C, 4C)
    gamma = 1.0 + 0.1 * jax.random.normal(kg, (4 * C,), dtype=jnp.float32)
    beta = 0.1 * jax.random.normal(kb, (4 * C,), dtype=jnp.float32)
    weight = jax.random.normal(kw, (2 * C, 4 * C), dtype=jnp.float32) * 0.1

    # Parameter prep (transpose / affine folding / slab split) is hoisted out
    # of the per-step jit: computed once, at "model init" time.
    w_even, w_odd, bias = prepare_patch_merging_params(gamma, beta, weight)

    fwd = jax.jit(patch_merging_2d)
    out = jax.block_until_ready(fwd(x, w_even, w_odd, bias))

    ref = _reference(x, gamma, beta, weight)
    assert out.shape == (B, H // 2, W // 2, 2 * C), out.shape
    assert jnp.allclose(out, ref, atol=1e-4, rtol=1e-4), (
        float(jnp.max(jnp.abs(out - ref))))

    print("KERNEL_OK")
</pallas_src>

<mosaic_0001>
module attributes {stable_mosaic.version = 11 : i64} {
  func.func @_patch_merge_kernel(%arg0: i32, %arg1: memref<16x2x8x8xf32, #tpu.memory_space<vmem>>, %arg2: memref<8x8xf32, #tpu.memory_space<vmem>>, %arg3: memref<8x8xf32, #tpu.memory_space<vmem>>, %arg4: memref<1x8xf32, #tpu.memory_space<vmem>>, %arg5: memref<128x8xf32, #tpu.memory_space<vmem>>) attributes {dimension_semantics = [#tpu.dimension_semantics<parallel>], iteration_bounds = array<i64: 1>, scalar_prefetch = 0 : i64, scratch_operands = 0 : i64, tpu.core_type = #tpu.core_type<tc>, window_params = [{transform_indices = @transform_0, window_bounds = array<i64: 16, 2, 8, 8>}, {pipeline_mode = #tpu.pipeline_mode<synchronous>, transform_indices = @transform_1, window_bounds = array<i64: 8, 8>}, {pipeline_mode = #tpu.pipeline_mode<synchronous>, transform_indices = @transform_2, window_bounds = array<i64: 8, 8>}, {pipeline_mode = #tpu.pipeline_mode<synchronous>, transform_indices = @transform_3, window_bounds = array<i64: 1, 8>}, {transform_indices = @transform_4, window_bounds = array<i64: 128, 8>}]} {
    %c0 = arith.constant 0 : index
    %c0_0 = arith.constant 0 : index
    %c0_1 = arith.constant 0 : index
    %c0_2 = arith.constant 0 : index
    %0 = vector.load %arg1[%c0, %c0_0, %c0_1, %c0_2] : memref<16x2x8x8xf32, #tpu.memory_space<vmem>>, vector<16x1x8x8xf32>
    %1 = vector.shape_cast %0 : vector<16x1x8x8xf32> to vector<16x8x8xf32>
    %2 = vector.shape_cast %1 : vector<16x8x8xf32> to vector<128x8xf32>
    %c0_3 = arith.constant 0 : index
    %c1 = arith.constant 1 : index
    %c0_4 = arith.constant 0 : index
    %c0_5 = arith.constant 0 : index
    %3 = vector.load %arg1[%c0_3, %c1, %c0_4, %c0_5] : memref<16x2x8x8xf32, #tpu.memory_space<vmem>>, vector<16x1x8x8xf32>
    %4 = vector.shape_cast %3 : vector<16x1x8x8xf32> to vector<16x8x8xf32>
    %5 = vector.shape_cast %4 : vector<16x8x8xf32> to vector<128x8xf32>
    %cst = arith.constant dense<0.000000e+00> : vector<128xf32>
    %6 = vector.multi_reduction <add>, %2, %cst [1] : vector<128x8xf32> to vector<128xf32>
    %7 = vector.shape_cast %6 : vector<128xf32> to vector<128x1xf32>
    %cst_6 = arith.constant dense<0.000000e+00> : vector<128xf32>
    %8 = vector.multi_reduction <add>, %5, %cst_6 [1] : vector<128x8xf32> to vector<128xf32>
    %9 = vector.shape_cast %8 : vector<128xf32> to vector<128x1xf32>
    %10 = arith.addf %7, %9 : vector<128x1xf32>
    %cst_7 = arith.constant 6.250000e-02 : f32
    %11 = vector.broadcast %cst_7 : f32 to vector<128x1xf32>
    %12 = arith.mulf %10, %11 : vector<128x1xf32>
    %13 = vector.broadcast %12 : vector<128x1xf32> to vector<128x8xf32>
    %14 = arith.subf %2, %13 : vector<128x8xf32>
    %15 = vector.broadcast %12 : vector<128x1xf32> to vector<128x8xf32>
    %16 = arith.subf %5, %15 : vector<128x8xf32>
    %17 = arith.mulf %14, %14 : vector<128x8xf32>
    %cst_8 = arith.constant dense<0.000000e+00> : vector<128xf32>
    %18 = vector.multi_reduction <add>, %17, %cst_8 [1] : vector<128x8xf32> to vector<128xf32>
    %19 = vector.shape_cast %18 : vector<128xf32> to vector<128x1xf32>
    %20 = arith.mulf %16, %16 : vector<128x8xf32>
    %cst_9 = arith.constant dense<0.000000e+00> : vector<128xf32>
    %21 = vector.multi_reduction <add>, %20, %cst_9 [1] : vector<128x8xf32> to vector<128xf32>
    %22 = vector.shape_cast %21 : vector<128xf32> to vector<128x1xf32>
    %23 = arith.addf %19, %22 : vector<128x1xf32>
    %cst_10 = arith.constant 6.250000e-02 : f32
    %24 = vector.broadcast %cst_10 : f32 to vector<128x1xf32>
    %25 = arith.mulf %23, %24 : vector<128x1xf32>
    %cst_11 = arith.constant 9.99999974E-6 : f32
    %26 = vector.broadcast %cst_11 : f32 to vector<128x1xf32>
    %27 = arith.addf %25, %26 : vector<128x1xf32>
    %28 = math.rsqrt %27 : vector<128x1xf32>
    %c0_12 = arith.constant 0 : index
    %c0_13 = arith.constant 0 : index
    %29 = vector.load %arg2[%c0_12, %c0_13] : memref<8x8xf32, #tpu.memory_space<vmem>>, vector<8x8xf32>
    %cst_14 = arith.constant dense<0.000000e+00> : vector<128x8xf32>
    %30 = tpu.matmul %14, %29, %cst_14 {dimension_numbers = #tpu.dot_dimension_numbers<[1], [0], [0], [1], [0, 0, 1, 1], [], []>} : vector<128x8xf32>, vector<8x8xf32>, vector<128x8xf32> -> vector<128x8xf32>
    %c0_15 = arith.constant 0 : index
    %c0_16 = arith.constant 0 : index
    %31 = vector.load %arg3[%c0_15, %c0_16] : memref<8x8xf32, #tpu.memory_space<vmem>>, vector<8x8xf32>
    %cst_17 = arith.constant dense<0.000000e+00> : vector<128x8xf32>
    %32 = tpu.matmul %16, %31, %cst_17 {dimension_numbers = #tpu.dot_dimension_numbers<[1], [0], [0], [1], [0, 0, 1, 1], [], []>} : vector<128x8xf32>, vector<8x8xf32>, vector<128x8xf32> -> vector<128x8xf32>
    %33 = arith.addf %30, %32 : vector<128x8xf32>
    %34 = vector.broadcast %28 : vector<128x1xf32> to vector<128x8xf32>
    %35 = arith.mulf %33, %34 : vector<128x8xf32>
    %c0_18 = arith.constant 0 : index
    %c0_19 = arith.constant 0 : index
    %36 = vector.load %arg4[%c0_18, %c0_19] : memref<1x8xf32, #tpu.memory_space<vmem>>, vector<1x8xf32>
    %37 = vector.broadcast %36 : vector<1x8xf32> to vector<128x8xf32>
    %38 = arith.addf %35, %37 : vector<128x8xf32>
    %c0_20 = arith.constant 0 : index
    %c0_21 = arith.constant 0 : index
    %39 = vector.load %arg5[%c0_20, %c0_21] : memref<128x8xf32, #tpu.memory_space<vmem>>, vector<128x8xf32>
    tpu.vector_store %arg5[%c0_20, %c0_21], %38 {strides = array<i32>} : memref<128x8xf32, #tpu.memory_space<vmem>>, vector<128x8xf32>,
    return
  }
  func.func @transform_0(%arg0: i32) -> (i32, i32, i32, i32) {
    %c0_i32 = arith.constant 0 : i32
    %c0_i32_0 = arith.constant 0 : i32
    %c0_i32_1 = arith.constant 0 : i32
    %c0_i32_2 = arith.constant 0 : i32
    return %arg0, %c0_i32, %c0_i32_0, %c0_i32_1 : i32, i32, i32, i32
  }
  func.func @transform_1(%arg0: i32) -> (i32, i32) {
    %c0_i32 = arith.constant 0 : i32
    %c0_i32_0 = arith.constant 0 : i32
    %c0_i32_1 = arith.constant 0 : i32
    return %c0_i32, %c0_i32_0 : i32, i32
  }
  func.func @transform_2(%arg0: i32) -> (i32, i32) {
    %c0_i32 = arith.constant 0 : i32
    %c0_i32_0 = arith.constant 0 : i32
    %c0_i32_1 = arith.constant 0 : i32
    return %c0_i32, %c0_i32_0 : i32, i32
  }
  func.func @transform_3(%arg0: i32) -> (i32, i32) {
    %c0_i32 = arith.constant 0 : i32
    %c0_i32_0 = arith.constant 0 : i32
    %c0_i32_1 = arith.constant 0 : i32
    return %c0_i32, %c0_i32_0 : i32, i32
  }
  func.func @transform_4(%arg0: i32) -> (i32, i32) {
    %c0_i32 = arith.constant 0 : i32
    %c0_i32_0 = arith.constant 0 : i32
    return %arg0, %c0_i32 : i32, i32
  }
}

</mosaic_0001>

<bundles_post_ra>
// kernel: patch_merging_2d.1
= control target key start
LH: loop header
LB: loop body
LE: loop exit
PB: predicated region body
PF: predicated region fallthrough
CT: control target
= control target key end

     0   :  { %vm51_vm0 = vcmask 64512   ;;  %s1708_s0 = inlined_call_operand.vmem [shape: f32[16,2,8,8], index: 0, kind: input, shape index: {}]   ;;  %s1709_s1 = inlined_call_operand.vmem [shape: f32[8,8], index: 1, kind: input, shape index: {}]   ;;  %s1710_s2 = inlined_call_operand.vmem [shape: f32[8,8], index: 2, kind: input, shape index: {}]   ;;  %s1711_s3 = inlined_call_operand.vmem [shape: f32[1,8], index: 3, kind: input, shape index: {}]   ;;  %s1712_s4 = inlined_call_operand.hbm [shape: f32[128,8], index: 4, kind: output, shape index: {}]  }
   0x1   :  { %v989_v0 = vld [vmem:[%s1708_s0 + $0x90] sm:$0xff]  ;;  %v994_v1 = vld [vmem:[%s1708_s0 + $0x80] sm:$0xff]  ;;  %v1010_v6 = vld [vmem:[%s1708_s0 + $0x98] sm:$0xff] }
   0x2   :  { %v999_v2 = vld [vmem:[%s1708_s0] sm:$0xff]  ;;  %v79_v3 = vsel %vm51_vm0, %v989_v0, 0.0  ;;  %v76_v4 = vsel %vm51_vm0, %v994_v1, 0.0  ;;  %v1015_v7 = vld [vmem:[%s1708_s0 + $0x88] sm:$0xff] }
   0x3   :  { %v52_v5 = vsel %vm51_vm0, %v999_v2, 0.0  ;;  %80 = vadd.xlane.f32.xlu2 %v79_v3  ;;  %77 = vadd.xlane.f32.xlu0 %v76_v4  ;;  %v1020_v8 = vld [vmem:[%s1708_s0 + $0x8] sm:$0xff] }
   0x4   :  { %53 = vadd.xlane.f32.xlu1 %v52_v5 }
   0x5   :  { %9 = vsyncpa [#allocation3], 0  ;;  %v127_v9 = vsel %vm51_vm0, %v1010_v6, 0.0  ;;  %v124_v10 = vsel %vm51_vm0, %v1015_v7, 0.0  ;;  %v100_v11 = vsel %vm51_vm0, %v1020_v8, 0.0  ;;  %v1031_v12 = vld [vmem:[%s1708_s0 + $0xa0] sm:$0xff] }
   0x6   :  { %v1036_v13 = vld [vmem:[%s1708_s0 + $0x10] sm:$0xff]  ;;  %v1041_v14 = vld [vmem:[%s1708_s0 + $0x18] sm:$0xff]  ;;  %v82_v15 = vsel %vm51_vm0, %v1031_v12, 0.0  ;;  %v1052_v18 = vld [vmem:[%s1708_s0 + $0x28] sm:$0xff]  ;;  %s834_s7 = sshll.u32 %s1712_s4, 4  ;;  %s959_s8 = smov 128   ;;  %s835_s7 = int_to_ptr.hbm [resolvable:$true] %s834_s7 }
   0x7   :  { %v55_v16 = vsel %vm51_vm0, %v1036_v13, 0.0  ;;  %v103_v17 = vsel %vm51_vm0, %v1041_v14, 0.0  ;;  %v1057_v19 = vld [vmem:[%s1708_s0 + $0xa8] sm:$0xff]  ;;  %v1062_v20 = vld [vmem:[%s1708_s0 + $0x20] sm:$0xff]  ;;  %v106_v21 = vsel %vm51_vm0, %v1052_v18, 0.0  ;;  %v1073_v24 = vld [vmem:[%s1708_s0 + $0x30] sm:$0xff] }
   0x8   :  { %v130_v22 = vsel %vm51_vm0, %v1057_v19, 0.0  ;;  %v58_v23 = vsel %vm51_vm0, %v1062_v20, 0.0  ;;  %v1078_v25 = vld [vmem:[%s1708_s0 + $0xb0] sm:$0xff]  ;;  %v1083_v26 = vld [vmem:[%s1708_s0 + $0xb8] sm:$0xff]  ;;  %v61_v27 = vsel %vm51_vm0, %v1073_v24, 0.0  ;;  %v1094_v30 = vld [vmem:[%s1708_s0 + $0xc8] sm:$0xff] }
   0x9   :  { %v85_v28 = vsel %vm51_vm0, %v1078_v25, 0.0  ;;  %v133_v29 = vsel %vm51_vm0, %v1083_v26, 0.0  ;;  %v1099_v31 = vld [vmem:[%s1708_s0 + $0x38] sm:$0xff]  ;;  %v1104_v32 = vld [vmem:[%s1708_s0 + $0xc0] sm:$0xff]  ;;  %v136_v33 = vsel %vm51_vm0, %v1094_v30, 0.0  ;;  %v1115_v36 = vld [vmem:[%s1708_s0 + $0xd0] sm:$0xff] }
   0xa   :  { %v109_v34 = vsel %vm51_vm0, %v1099_v31, 0.0  ;;  %v88_v35 = vsel %vm51_vm0, %v1104_v32, 0.0  ;;  %v1120_v37 = vld [vmem:[%s1708_s0 + $0x40] sm:$0xff]  ;;  %v1125_v38 = vld [vmem:[%s1708_s0 + $0x48] sm:$0xff]  ;;  %v91_v39 = vsel %vm51_vm0, %v1115_v36, 0.0  ;;  %v1136_v42 = vld [vmem:[%s1708_s0 + $0x58] sm:$0xff] }
   0xb   :  { %128 = vadd.xlane.f32.xlu2 %v127_v9  ;;  %125 = vadd.xlane.f32.xlu0 %v124_v10  ;;  %v64_v40 = vsel %vm51_vm0, %v1120_v37, 0.0  ;;  %v112_v41 = vsel %vm51_vm0, %v1125_v38, 0.0  ;;  %v1141_v43 = vld [vmem:[%s1708_s0 + $0xd8] sm:$0xff]  ;;  %v1146_v44 = vld [vmem:[%s1708_s0 + $0x50] sm:$0xff]  ;;  %v115_v45 = vsel %vm51_vm0, %v1136_v42, 0.0  ;;  %v1157_v48 = vld [vmem:[%s1708_s0 + $0x60] sm:$0xff] }
   0xc   :  { %101 = vadd.xlane.f32.xlu1 %v100_v11  ;;  %v139_v46 = vsel %vm51_vm0, %v1141_v43, 0.0  ;;  %v67_v47 = vsel %vm51_vm0, %v1146_v44, 0.0  ;;  %v1162_v49 = vld [vmem:[%s1708_s0 + $0xe0] sm:$0xff]  ;;  %v1167_v50 = vld [vmem:[%s1708_s0 + $0xe8] sm:$0xff]  ;;  %v70_v51 = vsel %vm51_vm0, %v1157_v48, 0.0  ;;  %v1178_v54 = vld [vmem:[%s1708_s0 + $0xf8] sm:$0xff] }
   0xd   :  { %v94_v52 = vsel %vm51_vm0, %v1162_v49, 0.0  ;;  %v142_v53 = vsel %vm51_vm0, %v1167_v50, 0.0  ;;  %v1183_v55 = vld [vmem:[%s1708_s0 + $0x68] sm:$0xff]  ;;  %v1188_v56 = vld [vmem:[%s1708_s0 + $0xf0] sm:$0xff]  ;;  %v145_v57 = vsel %vm51_vm0, %v1178_v54, 0.0  ;;  %v1204_v61 = vld [vmem:[%s1708_s0 + $0x78] sm:$0xff] }
   0xe   :  { %v118_v58 = vsel %vm51_vm0, %v1183_v55, 0.0  ;;  %v97_v59 = vsel %vm51_vm0, %v1188_v56, 0.0  ;;  %v1199_v60 = vld [vmem:[%s1708_s0 + $0x70] sm:$0xff]  ;;  %v121_v63 = vsel %vm51_vm0, %v1204_v61, 0.0  ;;  %v549_v3 = vld [vmem:[%s1710_s2] sm:$0xff]  ;;  %s958_s2 = smov [#allocation2]  }
   0xf   :  { %v73_v62 = vsel %vm51_vm0, %v1199_v60, 0.0  ;;  %v548_v4 = vld [vmem:[%s1709_s1] sm:$0xff]  ;;  %613 = vmatpush.msra.mxu0 %v549_v3  ;;  %894 = vmatpush.msra.mxu2 %v549_v3  ;;  %s960_s9 = smov 8  }
  0x10   :  { %726 = vmatpush.msra.mxu1 %v548_v4  ;;  %895 = vmatpush.msra.mxu3 %v548_v4 }
  0x13   :  { %83 = vadd.xlane.f32.xlu2 %v82_v15  ;;  %56 = vadd.xlane.f32.xlu0 %v55_v16 }
  0x14   :  { %104 = vadd.xlane.f32.xlu1 %v103_v17 }
  0x1b   :  { %107 = vadd.xlane.f32.xlu2 %v106_v21  ;;  %131 = vadd.xlane.f32.xlu0 %v130_v22 }
  0x1c   :  { %59 = vadd.xlane.f32.xlu1 %v58_v23 }
  0x23   :  { %62 = vadd.xlane.f32.xlu2 %v61_v27  ;;  %86 = vadd.xlane.f32.xlu0 %v85_v28 }
  0x24   :  { %134 = vadd.xlane.f32.xlu1 %v133_v29 }
  0x2b   :  { %137 = vadd.xlane.f32.xlu2 %v136_v33  ;;  %110 = vadd.xlane.f32.xlu0 %v109_v34 }
  0x2c   :  { %89 = vadd.xlane.f32.xlu1 %v88_v35 }
  0x33   :  { %92 = vadd.xlane.f32.xlu2 %v91_v39  ;;  %65 = vadd.xlane.f32.xlu0 %v64_v40 }
  0x34   :  { %113 = vadd.xlane.f32.xlu1 %v112_v41 }
  0x3b   :  { %116 = vadd.xlane.f32.xlu2 %v115_v45  ;;  %140 = vadd.xlane.f32.xlu0 %v139_v46 }
  0x3c   :  { %68 = vadd.xlane.f32.xlu1 %v67_v47 }
  0x43   :  { %71 = vadd.xlane.f32.xlu2 %v70_v51  ;;  %95 = vadd.xlane.f32.xlu0 %v94_v52 }
  0x44   :  { %143 = vadd.xlane.f32.xlu1 %v142_v53 }
  0x4b   :  { %146 = vadd.xlane.f32.xlu2 %v145_v57  ;;  %119 = vadd.xlane.f32.xlu0 %v118_v58 }
  0x4c   :  { %98 = vadd.xlane.f32.xlu1 %v97_v59 }
  0x53   :  { %74 = vadd.xlane.f32.xlu0 %v73_v62 }
  0x54   :  { %122 = vadd.xlane.f32.xlu1 %v121_v63 }
  0x76   :  { %v81_v5 = vpop.xlane.xlu2 %80  ;;  %v78_v9 = vpop.xlane.xlu0 %77 }
  0x77   :  { %v54_v10 = vpop.xlane.xlu1 %53 }
  0x7e   :  { %v129_v11 = vpop.xlane.xlu2 %128  ;;  %v126_v15 = vpop.xlane.xlu0 %125 }
  0x7f   :  { %v156_v16 = vadd.f32 %v126_v15, %v78_v9  ;;  %v102_v17 = vpop.xlane.xlu1 %101  ;;  %v157_v22 = vadd.f32 %v129_v11, %v81_v5 }
  0x80   :  { %v148_v21 = vadd.f32 %v102_v17, %v54_v10 }
  0x81   :  { %v172_v23 = vmul.f32 0.0625, %v156_v16  ;;  %v173_v35 = vmul.f32 0.0625, %v157_v22 }
  0x82   :  { %v164_v27 = vmul.f32 0.0625, %v148_v21 }
  0x83   :  { %v1217_v28 = vsub.f32 %v994_v1, %v172_v23  ;;  %v1220_v29 = vsub.f32 %v1015_v7, %v172_v23  ;;  %v1235_v41 = vsub.f32 %v989_v0, %v173_v35  ;;  %v1238_v45 = vsub.f32 %v1010_v6, %v173_v35 }
  0x84   :  { %v180_v33 = vsub.f32 %v999_v2, %v164_v27  ;;  %v1224_v34 = vsub.f32 %v1020_v8, %v164_v27 }
  0x85   :  { %870 = vmatmul.msk.f32.vlgmr.msra.gmra.mxu2 %vm51_vm0, %v1220_v29  ;;  %886 = vmatmul.msk.f32.vlgmr.msra.gmra.mxu3 %vm51_vm0, %v1217_v28 }
  0x86   :  { %862 = vmatmul.msk.f32.vlgmr.msra.gmra.mxu0 %vm51_vm0, %v1224_v34  ;;  %878 = vmatmul.msk.f32.vlgmr.msra.gmra.mxu1 %vm51_vm0, %v180_v33  ;;  %v84_v1 = vpop.xlane.xlu2 %83  ;;  %v57_v7 = vpop.xlane.xlu0 %56  ;;  %v212_v39 = vmul.f32 %v180_v33, %v180_v33 }
  0x87   :  { %v105_v40 = vpop.xlane.xlu1 %104 }
  0x88   :  { %v149_v2 = vadd.f32 %v105_v40, %v57_v7  ;;  %v228_v8 = vsel %vm51_vm0, %v212_v39, 0.0 }
  0x89   :  { %229 = vadd.xlane.f32.xlu2 %v228_v8 }
  0x8a   :  { %v165_v46 = vmul.f32 0.0625, %v149_v2 }
  0x8c   :  { %v181_v47 = vsub.f32 %v1036_v13, %v165_v46  ;;  %v1242_v51 = vsub.f32 %v1041_v14, %v165_v46 }
  0x8d   :  { %871 = vmatmul.msk.f32.gmra.mxu2 %vm51_vm0, %v1238_v45  ;;  %887 = vmatmul.msk.f32.gmra.mxu3 %vm51_vm0, %v1235_v41 }
  0x8e   :  { %863 = vmatmul.msk.f32.gmra.mxu0 %vm51_vm0, %v1242_v51  ;;  %879 = vmatmul.msk.f32.gmra.mxu1 %vm51_vm0, %v181_v47  ;;  %v108_v0 = vpop.xlane.xlu2 %107  ;;  %v132_v6 = vpop.xlane.xlu0 %131  ;;  %v213_v52 = vmul.f32 %v181_v47, %v181_v47 }
  0x8f   :  { %v158_v53 = vadd.f32 %v132_v6, %v84_v1  ;;  %v60_v57 = vpop.xlane.xlu1 %59 }
  0x90   :  { %v150_v13 = vadd.f32 %v108_v0, %v60_v57  ;;  %v231_v14 = vsel %vm51_vm0, %v213_v52, 0.0 }
  0x91   :  { %v174_v58 = vmul.f32 0.0625, %v158_v53  ;;  %232 = vadd.xlane.f32.xlu0 %v231_v14 }
  0x92   :  { %v166_v59 = vmul.f32 0.0625, %v150_v13 }
  0x93   :  { %v1253_v62 = vsub.f32 %v1031_v12, %v174_v58  ;;  %v1256_v63 = vsub.f32 %v1057_v19, %v174_v58 }
  0x94   :  { %v182_v3 = vsub.f32 %v1062_v20, %v166_v59  ;;  %v1260_v4 = vsub.f32 %v1052_v18, %v166_v59 }
  0x95   :  { %872 = vmatmul.msk.f32.gmra.mxu2 %vm51_vm0, %v1256_v63  ;;  %888 = vmatmul.msk.f32.gmra.mxu3 %vm51_vm0, %v1253_v62 }
  0x96   :  { %864 = vmatmul.msk.f32.gmra.mxu0 %vm51_vm0, %v1260_v4  ;;  %880 = vmatmul.msk.f32.gmra.mxu1 %vm51_vm0, %v182_v3  ;;  %v63_v12 = vpop.xlane.xlu2 %62  ;;  %v87_v5 = vpop.xlane.xlu0 %86  ;;  %v214_v19 = vmul.f32 %v182_v3, %v182_v3 }
  0x97   :  { %v135_v9 = vpop.xlane.xlu1 %134 }
  0x98   :  { %v159_v10 = vadd.f32 %v135_v9, %v87_v5  ;;  %v234_v20 = vsel %vm51_vm0, %v214_v19, 0.0 }
  0x99   :  { %235 = vadd.xlane.f32.xlu1 %v234_v20 }
  0x9a   :  { %v175_v18 = vmul.f32 0.0625, %v159_v10  ;;  %v220_v10 = vmul.f32 %v1217_v28, %v1217_v28 }
  0x9c   :  { %v1271_v11 = vsub.f32 %v1078_v25, %v175_v18  ;;  %v1274_v15 = vsub.f32 %v1083_v26, %v175_v18 }
  0x9e   :  { %873 = vmatmul.msk.f32.gmra.mxu2 %vm51_vm0, %v1274_v15  ;;  %889 = vmatmul.msk.f32.gmra.mxu3 %vm51_vm0, %v1271_v11  ;;  %v138_v16 = vpop.xlane.xlu2 %137  ;;  %v111_v17 = vpop.xlane.xlu0 %110 }
  0x9f   :  { %v151_v21 = vadd.f32 %v111_v17, %v63_v12  ;;  %v90_v22 = vpop.xlane.xlu1 %89 }
  0xa0   :  { %v160_v23 = vadd.f32 %v138_v16, %v90_v22  ;;  %v252_v22 = vsel %vm51_vm0, %v220_v10, 0.0 }
  0xa1   :  { %v167_v27 = vmul.f32 0.0625, %v151_v21 }
  0xa2   :  { %v176_v33 = vmul.f32 0.0625, %v160_v23 }
  0xa3   :  { %v183_v35 = vsub.f32 %v1073_v24, %v167_v27  ;;  %v1282_v25 = vsub.f32 %v1099_v31, %v167_v27 }
  0xa4   :  { %v1285_v26 = vsub.f32 %v1104_v32, %v176_v33  ;;  %v1288_v1 = vsub.f32 %v1094_v30, %v176_v33 }
  0xa5   :  { %865 = vmatmul.msk.f32.gmra.mxu0 %vm51_vm0, %v1282_v25  ;;  %881 = vmatmul.msk.f32.gmra.mxu1 %vm51_vm0, %v183_v35  ;;  %v215_v7 = vmul.f32 %v183_v35, %v183_v35  ;;  %v223_v35 = vmul.f32 %v1271_v11, %v1271_v11 }
  0xa6   :  { %874 = vmatmul.msk.f32.gmra.mxu2 %vm51_vm0, %v1288_v1  ;;  %890 = vmatmul.msk.f32.gmra.mxu3 %vm51_vm0, %v1285_v26  ;;  %v93_v24 = vpop.xlane.xlu2 %92  ;;  %v66_v31 = vpop.xlane.xlu0 %65 }
  0xa7   :  { %v114_v39 = vpop.xlane.xlu1 %113  ;;  %v237_v32 = vsel %vm51_vm0, %v215_v7, 0.0 }
  0xa8   :  { %v152_v40 = vadd.f32 %v114_v39, %v66_v31  ;;  %238 = vadd.xlane.f32.xlu2 %v237_v32  ;;  %v221_v31 = vmul.f32 %v1235_v41, %v1235_v41  ;;  %v222_v41 = vmul.f32 %v1253_v62, %v1253_v62 }
  0xaa   :  { %v168_v30 = vmul.f32 0.0625, %v152_v40 }
  0xac   :  { %v184_v2 = vsub.f32 %v1120_v37, %v168_v30  ;;  %v1300_v8 = vsub.f32 %v1125_v38, %v168_v30 }
  0xae   :  { %866 = vmatmul.msk.f32.gmra.mxu0 %vm51_vm0, %v1300_v8  ;;  %882 = vmatmul.msk.f32.gmra.mxu1 %vm51_vm0, %v184_v2  ;;  %v117_v46 = vpop.xlane.xlu2 %116  ;;  %v141_v47 = vpop.xlane.xlu0 %140  ;;  %v216_v0 = vmul.f32 %v184_v2, %v184_v2  ;;  %v255_v2 = vsel %vm51_vm0, %v221_v31, 0.0 }
  0xaf   :  { %v161_v6 = vadd.f32 %v141_v47, %v93_v24  ;;  %v69_v52 = vpop.xlane.xlu1 %68  ;;  %v261_v24 = vsel %vm51_vm0, %v223_v35, 0.0 }
  0xb0   :  { %v153_v53 = vadd.f32 %v117_v46, %v69_v52  ;;  %v240_v57 = vsel %vm51_vm0, %v216_v0, 0.0  ;;  %v258_v52 = vsel %vm51_vm0, %v222_v41, 0.0 }
  0xb1   :  { %v177_v13 = vmul.f32 0.0625, %v161_v6  ;;  %241 = vadd.xlane.f32.xlu0 %v240_v57  ;;  %v280_v57 = vmul.f32 %v1300_v8, %v1300_v8 }
  0xb2   :  { %v169_v14 = vmul.f32 0.0625, %v153_v53 }
  0xb3   :  { %v1307_v37 = vsub.f32 %v1115_v36, %v177_v13  ;;  %v1310_v38 = vsub.f32 %v1141_v43, %v177_v13  ;;  %v304_v62 = vsel %vm51_vm0, %v280_v57, 0.0 }
  0xb4   :  { %v185_v58 = vsub.f32 %v1146_v44, %v169_v14  ;;  %v1314_v59 = vsub.f32 %v1136_v42, %v169_v14  ;;  %v278_v14 = vmul.f32 %v1260_v4, %v1260_v4  ;;  %v279_v4 = vmul.f32 %v1282_v25, %v1282_v25 }
  0xb5   :  { %875 = vmatmul.msk.f32.gmra.mxu2 %vm51_vm0, %v1310_v38  ;;  %891 = vmatmul.msk.f32.gmra.mxu3 %vm51_vm0, %v1307_v37 }
  0xb6   :  { %867 = vmatmul.msk.f32.gmra.mxu0 %vm51_vm0, %v1314_v59  ;;  %883 = vmatmul.msk.f32.gmra.mxu1 %vm51_vm0, %v185_v58  ;;  %v72_v36 = vpop.xlane.xlu2 %71  ;;  %v96_v3 = vpop.xlane.xlu0 %95  ;;  %v217_v43 = vmul.f32 %v185_v58, %v185_v58  ;;  %v298_v8 = vsel %vm51_vm0, %v278_v14, 0.0 }
  0xb7   :  { %v144_v12 = vpop.xlane.xlu1 %143 }
  0xb8   :  { %v162_v5 = vadd.f32 %v144_v12, %v96_v3  ;;  %v243_v44 = vsel %vm51_vm0, %v217_v43, 0.0  ;;  %v281_v43 = vmul.f32 %v1314_v59, %v1314_v59  ;;  %v286_v12 = vmul.f32 %v1256_v63, %v1256_v63 }
  0xb9   :  { %244 = vadd.xlane.f32.xlu1 %v243_v44  ;;  %v301_v44 = vsel %vm51_vm0, %v279_v4, 0.0  ;;  %v289_v59 = vmul.f32 %v1310_v38, %v1310_v38 }
  0xba   :  { %v178_v42 = vmul.f32 0.0625, %v162_v5  ;;  %v322_v5 = vsel %vm51_vm0, %v286_v12, 0.0 }
  0xbc   :  { %v194_v19 = vsub.f32 %v1162_v49, %v178_v42  ;;  %v1326_v9 = vsub.f32 %v1167_v50, %v178_v42  ;;  %v284_v42 = vmul.f32 %v1220_v29, %v1220_v29  ;;  %v285_v29 = vmul.f32 %v1238_v45, %v1238_v45 }
  0xbe   :  { %876 = vmatmul.msk.f32.gmra.mxu2 %vm51_vm0, %v1326_v9  ;;  %892 = vmatmul.msk.f32.gmra.mxu3 %vm51_vm0, %v194_v19  ;;  %v147_v20 = vpop.xlane.xlu2 %146  ;;  %v120_v18 = vpop.xlane.xlu0 %119  ;;  %v226_v40 = vmul.f32 %v194_v19, %v194_v19  ;;  %v316_v25 = vsel %vm51_vm0, %v284_v42, 0.0  ;;  %v331_v19 = vsel %vm51_vm0, %v289_v59, 0.0 }
  0xbf   :  { %v154_v16 = vadd.f32 %v120_v18, %v72_v36  ;;  %v99_v17 = vpop.xlane.xlu1 %98  ;;  %v276_v36 = vmul.f32 %v1224_v34, %v1224_v34  ;;  %v307_v34 = vsel %vm51_vm0, %v281_v43, 0.0  ;;  %v319_v18 = vsel %vm51_vm0, %v285_v29, 0.0 }
  0xc0   :  { %v163_v21 = vadd.f32 %v147_v20, %v99_v17  ;;  %v270_v46 = vsel %vm51_vm0, %v226_v40, 0.0  ;;  %v287_v20 = vmul.f32 %v1274_v15, %v1274_v15  ;;  %v288_v17 = vmul.f32 %v1288_v1, %v1288_v1 }
  0xc1   :  { %v170_v23 = vmul.f32 0.0625, %v154_v16  ;;  %253 = vadd.xlane.f32.xlu1 %v252_v22  ;;  %v292_v3 = vsel %vm51_vm0, %v276_v36, 0.0  ;;  %v290_v16 = vmul.f32 %v1326_v9, %v1326_v9 }
  0xc2   :  { %v179_v49 = vmul.f32 0.0625, %v163_v21  ;;  %v325_v38 = vsel %vm51_vm0, %v287_v20, 0.0  ;;  %v328_v15 = vsel %vm51_vm0, %v288_v17, 0.0 }
  0xc3   :  { %v186_v50 = vsub.f32 %v1157_v48, %v170_v23  ;;  %v1336_v27 = vsub.f32 %v1183_v55, %v170_v23  ;;  %v334_v21 = vsel %vm51_vm0, %v290_v16, 0.0 }
  0xc4   :  { %v195_v28 = vsub.f32 %v1188_v56, %v179_v49  ;;  %v1340_v33 = vsub.f32 %v1178_v54, %v179_v49 }
  0xc5   :  { %868 = vmatmul.msk.f32.gmra.mxu0 %vm51_vm0, %v1336_v27  ;;  %884 = vmatmul.msk.f32.gmra.mxu1 %vm51_vm0, %v186_v50  ;;  %v218_v7 = vmul.f32 %v186_v50, %v186_v50  ;;  %v282_v63 = vmul.f32 %v1336_v27, %v1336_v27 }
  0xc6   :  { %877 = vmatmul.msk.f32.gmra.mxu2 %vm51_vm0, %v1340_v33  ;;  %893 = vmatmul.msk.f32.gmra.mxu3 %vm51_vm0, %v195_v28  ;;  %v75_v48 = vpop.xlane.xlu0 %74  ;;  %v227_v53 = vmul.f32 %v195_v28, %v195_v28  ;;  %v291_v45 = vmul.f32 %v1340_v33, %v1340_v33 }
  0xc7   :  { %v123_v55 = vpop.xlane.xlu1 %122  ;;  %v246_v56 = vsel %vm51_vm0, %v218_v7, 0.0  ;;  %v310_v10 = vsel %vm51_vm0, %v282_v63, 0.0 }
  0xc8   :  { %v155_v54 = vadd.f32 %v123_v55, %v75_v48  ;;  %247 = vadd.xlane.f32.xlu2 %v246_v56  ;;  %v337_v22 = vsel %vm51_vm0, %v291_v45, 0.0 }
  0xc9   :  { %262 = vadd.xlane.f32.xlu1 %v261_v24 }
  0xca   :  { %v171_v11 = vmul.f32 0.0625, %v155_v54 }
  0xcc   :  { %v187_v39 = vsub.f32 %v1199_v60, %v171_v11  ;;  %v203_v32 = vsub.f32 %v1204_v61, %v171_v11  ;;  %v224_v60 = vmul.f32 %v1285_v26, %v1285_v26  ;;  %v277_v61 = vmul.f32 %v1242_v51, %v1242_v51 }
  0xcd   :  { %v225_v26 = vmul.f32 %v1307_v37, %v1307_v37  ;;  %v273_v51 = vsel %vm51_vm0, %v227_v53, 0.0 }
  0xce   :  { %869 = vmatmul.msk.f32.gmra.mxu0 %vm51_vm0, %v203_v32  ;;  %885 = vmatmul.msk.f32.gmra.mxu1 %vm51_vm0, %v187_v39  ;;  %v219_v30 = vmul.f32 %v187_v39, %v187_v39  ;;  %v264_v0 = vsel %vm51_vm0, %v224_v60, 0.0  ;;  %v295_v6 = vsel %vm51_vm0, %v277_v61, 0.0  ;;  %v283_v58 = vmul.f32 %v203_v32, %v203_v32 }
  0xcf   :  { %v267_v13 = vsel %vm51_vm0, %v225_v26, 0.0 }
  0xd0   :  { %256 = vadd.xlane.f32.xlu2 %v255_v2  ;;  %v249_v47 = vsel %vm51_vm0, %v219_v30, 0.0  ;;  %v313_v37 = vsel %vm51_vm0, %v283_v58, 0.0 }
  0xd1   :  { %271 = vadd.xlane.f32.xlu1 %v270_v46  ;;  %250 = vadd.xlane.f32.xlu0 %v249_v47 }
  0xd8   :  { %265 = vadd.xlane.f32.xlu2 %v264_v0 }
  0xd9   :  { %296 = vadd.xlane.f32.xlu1 %v295_v6  ;;  %259 = vadd.xlane.f32.xlu0 %v258_v52 }
  0xe0   :  { %274 = vadd.xlane.f32.xlu2 %v273_v51 }
  0xe1   :  { %305 = vadd.xlane.f32.xlu1 %v304_v62  ;;  %268 = vadd.xlane.f32.xlu0 %v267_v13 }
  0xe8   :  { %299 = vadd.xlane.f32.xlu2 %v298_v8 }
  0xe9   :  { %314 = vadd.xlane.f32.xlu1 %v313_v37  ;;  %293 = vadd.xlane.f32.xlu0 %v292_v3 }
  0xf0   :  { %308 = vadd.xlane.f32.xlu2 %v307_v34 }
  0xf1   :  { %323 = vadd.xlane.f32.xlu1 %v322_v5  ;;  %302 = vadd.xlane.f32.xlu0 %v301_v44 }
  0xf8   :  { %317 = vadd.xlane.f32.xlu2 %v316_v25 }
  0xf9   :  { %332 = vadd.xlane.f32.xlu1 %v331_v19  ;;  %311 = vadd.xlane.f32.xlu0 %v310_v10 }
  0xfc   :  { %v230_v9 = vpop.xlane.xlu2 %229 }
 0x100   :  { %326 = vadd.xlane.f32.xlu2 %v325_v38 }
 0x101   :  { %320 = vadd.xlane.f32.xlu0 %v319_v18 }
 0x103   :  { %v1417_v23 = vpop.f32.mrf.mxu0  ;;  %v1419_v50 = vpop.f32.mrf.mxu1 }
 0x104   :  { %v233_v7 = vpop.xlane.xlu0 %232 }
 0x108   :  { %335 = vadd.xlane.f32.xlu2 %v334_v21  ;;  %v1455_v62 = vpop.f32.mrf.mxu2  ;;  %v1457_v13 = vpop.f32.mrf.mxu3 }
 0x109   :  { %329 = vadd.xlane.f32.xlu0 %v328_v15 }
 0x10b   :  { %v618_v1 = vpop.f32.mrf.mxu0  ;;  %v731_v28 = vpop.f32.mrf.mxu1 }
 0x10c   :  { %v236_v49 = vpop.xlane.xlu1 %235  ;;  %v732_v45 = vadd.f32 %v731_v28, %v618_v1  ;;  %v1488_v1 = vadd.f32 %v1419_v50, %v1417_v23 }
 0x110   :  { %v1466_v10 = vpop.f32.mrf.mxu2  ;;  %v1468_v20 = vpop.f32.mrf.mxu3 }
 0x111   :  { %338 = vadd.xlane.f32.xlu0 %v337_v22  ;;  %v1481_v22 = vld [vmem:[%s1711_s3] ss:$0 sm:$0xff]  ;;  %s832_s3 = sshll.u32 %s958_s2, 4  ;;  %s833_s3 = int_to_ptr.vmem [resolvable:$true] %s832_s3 }
 0x113   :  { %v1427_v55 = vpop.f32.mrf.mxu0  ;;  %v1429_v33 = vpop.f32.mrf.mxu1 }
 0x11b   :  { %v1423_v35 = vpop.xlane.xlu2 %238 }
 0x122   :  { %v1435_v11 = vpop.f32.mrf.mxu0  ;;  %v1437_v31 = vpop.f32.mrf.mxu1 }
 0x124   :  { %v242_v54 = vpop.xlane.xlu0 %241 }
 0x12b   :  { %v1443_v30 = vpop.f32.mrf.mxu0  ;;  %v1445_v2 = vpop.f32.mrf.mxu1 }
 0x12c   :  { %v1421_v27 = vpop.xlane.xlu1 %244  ;;  %v741_v23 = vadd.f32 %v1445_v2, %v1443_v30 }
 0x133   :  { %v1449_v6 = vpop.f32.mrf.mxu0  ;;  %v743_v57 = vpop.f32.mrf.mxu1 }
 0x134   :  { %v1425_v48 = vpop.xlane.xlu1 %253 }
 0x13b   :  { %v1431_v56 = vpop.xlane.xlu2 %247 }
 0x13c   :  { %v1433_v24 = vpop.xlane.xlu1 %262 }
 0x142   :  { %v1461_v8 = vpop.f32.mrf.mxu0  ;;  %v1464_v12 = vpop.f32.mrf.mxu1 }
 0x143   :  { %v1439_v39 = vpop.xlane.xlu2 %256 }
 0x144   :  { %v251_v32 = vpop.xlane.xlu0 %250  ;;  %v1441_v40 = vpop.xlane.xlu1 %271 }
 0x14b   :  { %v1447_v46 = vpop.xlane.xlu2 %265 }
 0x14c   :  { %v260_v47 = vpop.xlane.xlu0 %259  ;;  %v297_v60 = vpop.xlane.xlu1 %296 }
 0x14d   :  { %v341_v61 = vadd.f32 %v297_v60, %v233_v7 }
 0x14f   :  { %v357_v41 = vmul.f32 0.0625, %v341_v61 }
 0x151   :  { %v373_v0 = vadd.f32 1e-05, %v357_v41 }
 0x153   :  { %900 = vrsqrt.f32 %v373_v0  ;;  %v1451_v52 = vpop.xlane.xlu2 %274  ;;  %vm404_vm2 = vweird.f32 %v373_v0 }
 0x154   :  { %v1453_v53 = vpop.xlane.xlu0 %268  ;;  %v306_v26 = vpop.xlane.xlu1 %305 }
 0x155   :  { %v344_v51 = vadd.f32 %v306_v26, %v242_v54  ;;  %v1497_v26 = vadd.f32 %v1437_v31, %v1435_v11 }
 0x157   :  { %v360_v14 = vmul.f32 0.0625, %v344_v51  ;;  %v636_v51 = vpop.f32.mrf.mxu0 }
 0x159   :  { %v901_v58 = vpop.eup %900  ;;  %v1459_v36 = vadd.f32 1e-05, %v360_v14  ;;  %v749_v14 = vpop.f32.mrf.mxu1 }
 0x15a   :  { %v399_v37 = vmul.f32 %v901_v58, %v373_v0  ;;  %vm405_vm1 = vweird.f32 %v901_v58  ;;  %v1493_v0 = vadd.f32 %v1429_v33, %v1427_v55  ;;  %v1505_v55 = vadd.f32 %v743_v57, %v1449_v6  ;;  %v1522_v6 = vpop.f32.mrf.mxu2  ;;  %v1524_v57 = vpop.f32.mrf.mxu3 }
 0x15b   :  { %902 = vrsqrt.f32 %v1459_v36  ;;  %v300_v3 = vpop.xlane.xlu2 %299  ;;  %vm406_vm3 = vmor %vm404_vm2, %vm405_vm1  ;;  %vm434_vm5 = vweird.f32 %v1459_v36 }
 0x15c   :  { %v294_v43 = vpop.xlane.xlu0 %293  ;;  %v400_v4 = vmul.f32 %v901_v58, %v399_v37  ;;  %v342_v34 = vadd.f32 %v300_v3, %v236_v49  ;;  %v315_v44 = vpop.xlane.xlu1 %314  ;;  %v1511_v3 = vadd.f32 %v749_v14, %v636_v51 }
 0x15d   :  { %v340_v5 = vadd.f32 %v294_v43, %v230_v9  ;;  %v347_v42 = vadd.f32 %v315_v44, %v251_v32 }
 0x15e   :  { %v401_v59 = vmul.f32 0.5, %v400_v4  ;;  %v358_v63 = vmul.f32 0.0625, %v342_v34 }
 0x15f   :  { %v356_v25 = vmul.f32 0.0625, %v340_v5  ;;  %v363_v19 = vmul.f32 0.0625, %v347_v42 }
 0x160   :  { %v402_v29 = vsub.f32 1.5, %v401_v59  ;;  %v1470_v38 = vadd.f32 1e-05, %v358_v63 }
 0x161   :  { %v1472_v18 = vadd.f32 1e-05, %v356_v25  ;;  %v903_v16 = vpop.eup %902  ;;  %v1474_v17 = vadd.f32 1e-05, %v363_v19 }
 0x162   :  { %v403_v21 = vmul.f32 %v901_v58, %v402_v29  ;;  %v429_v15 = vmul.f32 %v903_v16, %v1459_v36  ;;  %904 = vrsqrt.f32 %v1470_v38  ;;  %vm435_vm4 = vweird.f32 %v903_v16 }
 0x163   :  { %906 = vrsqrt.f32 %v1472_v18  ;;  %v309_v49 = vpop.xlane.xlu2 %308  ;;  %vm436_vm6 = vmor %vm434_vm5, %vm435_vm4  ;;  %vm414_vm7 = vweird.f32 %v1470_v38  ;;  %vm394_vm8 = vweird.f32 %v1472_v18  ;;  %vm464_vm9 = vweird.f32 %v1474_v17 }
 0x164   :  { %v303_v9 = vpop.xlane.xlu0 %302  ;;  %v407_v7 = vsel %vm406_vm3, %v901_v58, %v403_v21  ;;  %v430_v54 = vmul.f32 %v903_v16, %v429_v15  ;;  %908 = vrsqrt.f32 %v1474_v17  ;;  %v345_v32 = vadd.f32 %v309_v49, %v1421_v27  ;;  %v324_v60 = vpop.xlane.xlu1 %323 }
 0x165   :  { %v777_v28 = vmul.f32 %v732_v45, %v407_v7  ;;  %v343_v61 = vadd.f32 %v303_v9, %v1423_v35  ;;  %v350_v41 = vadd.f32 %v324_v60, %v260_v47 }
 0x166   :  { %v431_v27 = vmul.f32 0.5, %v430_v54  ;;  %v361_v58 = vmul.f32 0.0625, %v345_v32 }
 0x167   :  { %v797_v50 = vadd.f32 %v1481_v22, %v777_v28  ;;  %v359_v37 = vmul.f32 0.0625, %v343_v61  ;;  %v366_v35 = vmul.f32 0.0625, %v350_v41 }
 0x168   :  { %v1502_v47 = vpop.eup %904  ;;  %v432_v33 = vsub.f32 1.5, %v431_v27  ;;  %v1507_v11 = vadd.f32 1e-05, %v361_v58 }
 0x169   :  { %v1509_v31 = vpop.eup %906  ;;  %813 = vst.msk [vmem:[#allocation2 + $0x8] sm:$0xff] %vm51_vm0, %v797_v50  ;;  %v409_v30 = vmul.f32 %v1502_v47, %v1470_v38  ;;  %v1516_v2 = vadd.f32 1e-05, %v359_v37  ;;  %v1518_v43 = vadd.f32 1e-05, %v366_v35  ;;  %vm415_vm10 = vweird.f32 %v1502_v47 }
 0x16a   :  { %v1520_v4 = vpop.eup %908  ;;  %v433_v34 = vmul.f32 %v903_v16, %v432_v33  ;;  %v389_v5 = vmul.f32 %v1509_v31, %v1472_v18  ;;  %910 = vrsqrt.f32 %v1507_v11  ;;  %vm395_vm11 = vweird.f32 %v1509_v31  ;;  %vm416_vm13 = vmor %vm414_vm7, %vm415_vm10 }
 0x16b   :  { %v410_v44 = vmul.f32 %v1502_v47, %v409_v30  ;;  %v459_v42 = vmul.f32 %v1520_v4, %v1474_v17  ;;  %v318_v59 = vpop.xlane.xlu2 %317  ;;  %912 = vrsqrt.f32 %v1516_v2  ;;  %vm465_vm12 = vweird.f32 %v1520_v4  ;;  %vm396_vm15 = vmor %vm394_vm8, %vm395_vm11 }
 0x16c   :  { %v312_v63 = vpop.xlane.xlu0 %311  ;;  %v437_v25 = vsel %vm436_vm6, %v903_v16, %v433_v34  ;;  %v390_v36 = vmul.f32 %v1509_v31, %v389_v5  ;;  %914 = vrsqrt.f32 %v1518_v43  ;;  %v333_v15 = vpop.xlane.xlu1 %332  ;;  %v348_v49 = vadd.f32 %v318_v59, %v1425_v48  ;;  %vm466_vm1 = vmor %vm464_vm9, %vm465_vm12 }
 0x16d   :  { %v780_v19 = vmul.f32 %v741_v23, %v437_v25  ;;  %v411_v29 = vmul.f32 0.5, %v410_v44  ;;  %v460_v21 = vmul.f32 %v1520_v4, %v459_v42  ;;  %v346_v16 = vadd.f32 %v312_v63, %v1431_v56  ;;  %v1585_v44 = vpop.f32.mrf.mxu2  ;;  %v1587_v42 = vpop.f32.mrf.mxu3 }
 0x16e   :  { %v391_v45 = vmul.f32 0.5, %v390_v36  ;;  %v364_v28 = vmul.f32 0.0625, %v348_v49  ;;  %v353_v41 = vadd.f32 %v333_v15, %v1453_v53  ;;  %vm444_vm14 = vweird.f32 %v1507_v11 }
 0x16f   :  { %v800_v9 = vadd.f32 %v1481_v22, %v780_v19  ;;  %v412_v7 = vsub.f32 1.5, %v411_v29  ;;  %v461_v54 = vmul.f32 0.5, %v460_v21  ;;  %v362_v61 = vmul.f32 0.0625, %v346_v16 }
 0x170   :  { %v1546_v32 = vpop.eup %910  ;;  %v392_v60 = vsub.f32 1.5, %v391_v45  ;;  %v1562_v53 = vadd.f32 1e-05, %v364_v28  ;;  %vm424_vm3 = vweird.f32 %v1516_v2  ;;  %vm494_vm7 = vweird.f32 %v1518_v43 }
 0x171   :  { %816 = vst.msk [vmem:[#allocation2 + $0x20] sm:$0xff] %vm51_vm0, %v800_v9  ;;  %v413_v51 = vmul.f32 %v1502_v47, %v412_v7  ;;  %v462_v48 = vsub.f32 1.5, %v461_v54  ;;  %v439_v56 = vmul.f32 %v1546_v32, %v1507_v11  ;;  %v1554_v14 = vpop.eup %912  ;;  %v1564_v58 = vadd.f32 1e-05, %v362_v61 }
 0x172   :  { %v393_v27 = vmul.f32 %v1509_v31, %v392_v60  ;;  %v1566_v23 = vpop.eup %914  ;;  %v419_v35 = vmul.f32 %v1554_v14, %v1516_v2  ;;  %vm445_vm2 = vweird.f32 %v1546_v32  ;;  %916 = vrsqrt.f32 %v1562_v53 }
 0x173   :  { %v417_v50 = vsel %vm416_vm13, %v1502_v47, %v413_v51  ;;  %v463_v38 = vmul.f32 %v1520_v4, %v462_v48  ;;  %v440_v37 = vmul.f32 %v1546_v32, %v439_v56  ;;  %v327_v33 = vpop.xlane.xlu2 %326  ;;  %v489_v18 = vmul.f32 %v1566_v23, %v1518_v43  ;;  %vm446_vm5 = vmor %vm444_vm14, %vm445_vm2 }
 0x174   :  { %v321_v30 = vpop.xlane.xlu0 %320  ;;  %v778_v34 = vmul.f32 %v1493_v0, %v417_v50  ;;  %v397_v5 = vsel %vm396_vm15, %v1509_v31, %v393_v27  ;;  %v369_v47 = vmul.f32 0.0625, %v353_v41  ;;  %v420_v31 = vmul.f32 %v1554_v14, %v419_v35 }
 0x175   :  { %v776_v59 = vmul.f32 %v1488_v1, %v397_v5  ;;  %v467_v63 = vsel %vm466_vm1, %v1520_v4, %v463_v38  ;;  %v441_v0 = vmul.f32 0.5, %v440_v37  ;;  %v490_v36 = vmul.f32 %v1566_v23, %v489_v18  ;;  %v1636_v38 = vpop.f32.mrf.mxu2 }
 0x176   :  { %v798_v25 = vadd.f32 %v1481_v22, %v778_v34  ;;  %v783_v17 = vmul.f32 %v1511_v3, %v467_v63  ;;  %v421_v21 = vmul.f32 0.5, %v420_v31  ;;  %918 = vrsqrt.f32 %v1564_v58 }
 0x177   :  { %v796_v19 = vadd.f32 %v1481_v22, %v776_v59  ;;  %v442_v29 = vsub.f32 1.5, %v441_v0  ;;  %v491_v4 = vmul.f32 0.5, %v490_v36  ;;  %vm425_vm4 = vweird.f32 %v1554_v14 }
 0x178   :  { %814 = vst.msk [vmem:[#allocation2 + $0x10] sm:$0xff] %vm51_vm0, %v798_v25  ;;  %v803_v1 = vadd.f32 %v1481_v22, %v783_v17  ;;  %v422_v15 = vsub.f32 1.5, %v421_v21  ;;  %v1605_v45 = vadd.f32 1e-05, %v369_v47  ;;  %vm495_vm6 = vweird.f32 %v1566_v23  ;;  %vm426_vm8 = vmor %vm424_vm3, %vm425_vm4 }
 0x179   :  { %812 = vst.msk [vmem:[#allocation2] sm:$0xff] %vm51_vm0, %v796_v19  ;;  %v443_v3 = vmul.f32 %v1546_v32, %v442_v29  ;;  %v492_v49 = vsub.f32 1.5, %v491_v4  ;;  %v351_v16 = vadd.f32 %v327_v33, %v1433_v24  ;;  %v349_v9 = vadd.f32 %v321_v30, %v1439_v39  ;;  %vm496_vm9 = vmor %vm494_vm7, %vm495_vm6 }
 0x17a   :  { %819 = vst.msk [vmem:[#allocation2 + $0x38] sm:$0xff] %vm51_vm0, %v803_v1  ;;  %v423_v54 = vmul.f32 %v1554_v14, %v422_v15  ;;  %920 = vrsqrt.f32 %v1605_v45  ;;  %v759_v41 = vadd.f32 %v1524_v57, %v1522_v6  ;;  %v1638_v6 = vpop.f32.mrf.mxu3  ;;  %v753_v17 = vadd.f32 %v1457_v13, %v1455_v62 }
 0x17b   :  { %v447_v7 = vsel %vm446_vm5, %v1546_v32, %v443_v3  ;;  %v336_v60 = vpop.xlane.xlu2 %335  ;;  %v493_v24 = vmul.f32 %v1566_v23, %v492_v49  ;;  %v367_v39 = vmul.f32 0.0625, %v351_v16  ;;  %v365_v61 = vmul.f32 0.0625, %v349_v9  ;;  %v917_v32 = vpop.eup %916 }
 0x17c   :  { %v330_v28 = vpop.xlane.xlu0 %329  ;;  %v781_v11 = vmul.f32 %v1505_v55, %v447_v7  ;;  %v427_v43 = vsel %vm426_vm8, %v1554_v14, %v423_v54  ;;  %v354_v55 = vadd.f32 %v336_v60, %v1441_v40  ;;  %v919_v48 = vpop.eup %918  ;;  %v469_v50 = vmul.f32 %v917_v32, %v1562_v53 }
 0x17d   :  { %v352_v51 = vadd.f32 %v330_v28, %v1447_v46  ;;  %v779_v56 = vmul.f32 %v1497_v26, %v427_v43  ;;  %v497_v27 = vsel %vm496_vm9, %v1566_v23, %v493_v24  ;;  %v449_v14 = vmul.f32 %v919_v48, %v1564_v58  ;;  %v654_v1 = vpop.f32.mrf.mxu2 }
 0x17e   :  { %v801_v2 = vadd.f32 %v1481_v22, %v781_v11  ;;  %v786_v57 = vmul.f32 %v759_v41, %v497_v27  ;;  %v470_v46 = vmul.f32 %v917_v32, %v469_v50  ;;  %v1643_v37 = vadd.f32 1e-05, %v367_v39 }
 0x17f   :  { %v799_v40 = vadd.f32 %v1481_v22, %v779_v56  ;;  %v1645_v35 = vadd.f32 1e-05, %v365_v61  ;;  %v450_v33 = vmul.f32 %v919_v48, %v449_v14  ;;  %v370_v30 = vmul.f32 0.0625, %v354_v55 }
 0x180   :  { %817 = vst.msk [vmem:[#allocation2 + $0x28] sm:$0xff] %vm51_vm0, %v801_v2  ;;  %v921_v26 = vpop.eup %920  ;;  %v806_v23 = vadd.f32 %v1481_v22, %v786_v57  ;;  %v368_v34 = vmul.f32 0.0625, %v352_v51  ;;  %v471_v5 = vmul.f32 0.5, %v470_v46  ;;  %922 = vrsqrt.f32 %v1643_v37 }
 0x181   :  { %815 = vst.msk [vmem:[#allocation2 + $0x18] sm:$0xff] %vm51_vm0, %v799_v40  ;;  %v519_v18 = vmul.f32 %v921_v26, %v1605_v45  ;;  %vm475_vm10 = vweird.f32 %v917_v32  ;;  %v451_v47 = vmul.f32 0.5, %v450_v33  ;;  %924 = vrsqrt.f32 %v1645_v35 }
 0x182   :  { %822 = vst.msk [vmem:[#allocation2 + $0x50] sm:$0xff] %vm51_vm0, %v806_v23  ;;  %v472_v63 = vsub.f32 1.5, %v471_v5  ;;  %v1653_v31 = vadd.f32 1e-05, %v370_v30  ;;  %v1655_v25 = vadd.f32 1e-05, %v368_v34  ;;  %vm455_vm11 = vweird.f32 %v919_v48  ;;  %v767_v4 = vpop.f32.mrf.mxu3 }
 0x183   :  { %v520_v0 = vmul.f32 %v921_v26, %v519_v18  ;;  %v452_v36 = vsub.f32 1.5, %v451_v47  ;;  %vm474_vm12 = vweird.f32 %v1562_v53  ;;  %vm454_vm14 = vweird.f32 %v1564_v58 }
 0x184   :  { %v339_v59 = vpop.xlane.xlu0 %338  ;;  %v473_v29 = vmul.f32 %v917_v32, %v472_v63  ;;  %926 = vrsqrt.f32 %v1653_v31  ;;  %vm476_vm13 = vmor %vm474_vm12, %vm475_vm10  ;;  %vm525_vm1 = vweird.f32 %v921_v26  ;;  %vm524_vm2 = vweird.f32 %v1605_v45 }
 0x185   :  { %v355_v19 = vadd.f32 %v339_v59, %v1451_v52  ;;  %v521_v21 = vmul.f32 0.5, %v520_v0  ;;  %v453_v3 = vmul.f32 %v919_v48, %v452_v36  ;;  %928 = vrsqrt.f32 %v1655_v25  ;;  %vm456_vm15 = vmor %vm454_vm14, %vm455_vm11  ;;  %v657_v14 = vpop.f32.mrf.mxu2 }
 0x186   :  { %v923_v13 = vpop.eup %922  ;;  %v747_v52 = vadd.f32 %v1464_v12, %v1461_v8  ;;  %v477_v15 = vsel %vm476_vm13, %v917_v32, %v473_v29  ;;  %v768_v28 = vadd.f32 %v767_v4, %v654_v1  ;;  %vm526_vm3 = vmor %vm524_vm2, %vm525_vm1  ;;  %vm504_vm6 = vweird.f32 %v1643_v37 }
 0x187   :  { %v371_v62 = vmul.f32 0.0625, %v355_v19  ;;  %v522_v53 = vsub.f32 1.5, %v521_v21  ;;  %v925_v49 = vpop.eup %924  ;;  %v784_v16 = vmul.f32 %v753_v17, %v477_v15  ;;  %v457_v9 = vsel %vm456_vm15, %v919_v48, %v453_v3 }
 0x188   :  { %v499_v7 = vmul.f32 %v923_v13, %v1643_v37  ;;  %v782_v54 = vmul.f32 %v747_v52, %v457_v9  ;;  %v479_v58 = vmul.f32 %v925_v49, %v1645_v35  ;;  %vm505_vm4 = vweird.f32 %v923_v13 }
 0x189   :  { %v523_v60 = vmul.f32 %v921_v26, %v522_v53  ;;  %v804_v11 = vadd.f32 %v1481_v22, %v784_v16  ;;  %v1672_v12 = vadd.f32 1e-05, %v371_v62  ;;  %vm485_vm5 = vweird.f32 %v925_v49  ;;  %vm506_vm7 = vmor %vm504_vm6, %vm505_vm4 }
 0x18a   :  { %v500_v8 = vmul.f32 %v923_v13, %v499_v7  ;;  %v927_v24 = vpop.eup %926  ;;  %v802_v39 = vadd.f32 %v1481_v22, %v782_v54  ;;  %v480_v32 = vmul.f32 %v925_v49, %v479_v58  ;;  %v770_v40 = vpop.f32.mrf.mxu3  ;;  %v762_v23 = vadd.f32 %v1587_v42, %v1585_v44 }
 0x18b   :  { %v527_v61 = vsel %vm526_vm3, %v921_v26, %v523_v60  ;;  %v929_v41 = vpop.eup %928  ;;  %820 = vst.msk [vmem:[#allocation2 + $0x40] sm:$0xff] %vm51_vm0, %v804_v11  ;;  %v529_v45 = vmul.f32 %v927_v24, %v1653_v31  ;;  %930 = vrsqrt.f32 %v1672_v12  ;;  %vm484_vm8 = vweird.f32 %v1645_v35 }
 0x18c   :  { %v789_v43 = vmul.f32 %v768_v28, %v527_v61  ;;  %v501_v55 = vmul.f32 0.5, %v500_v8  ;;  %818 = vst.msk [vmem:[#allocation2 + $0x30] sm:$0xff] %vm51_vm0, %v802_v39  ;;  %v481_v51 = vmul.f32 0.5, %v480_v32  ;;  %v509_v48 = vmul.f32 %v929_v41, %v1655_v25  ;;  %vm486_vm9 = vmor %vm484_vm8, %vm485_vm5 }
 0x18d   :  { %v530_v27 = vmul.f32 %v927_v24, %v529_v45  ;;  %v756_v34 = vadd.f32 %v1468_v20, %v1466_v10  ;;  %vm535_vm10 = vweird.f32 %v927_v24  ;;  %vm515_vm11 = vweird.f32 %v929_v41  ;;  %v660_v62 = vpop.f32.mrf.mxu2 }
 0x18e   :  { %v809_v2 = vadd.f32 %v1481_v22, %v789_v43  ;;  %v502_v56 = vsub.f32 1.5, %v501_v55  ;;  %v482_v50 = vsub.f32 1.5, %v481_v51  ;;  %v510_v57 = vmul.f32 %v929_v41, %v509_v48 }
 0x18f   :  { %v531_v26 = vmul.f32 0.5, %v530_v27  ;;  %vm534_vm12 = vweird.f32 %v1653_v31  ;;  %v771_v35 = vadd.f32 %v770_v40, %v657_v14  ;;  %vm514_vm14 = vweird.f32 %v1655_v25 }
 0x190   :  { %825 = vst.msk [vmem:[#allocation2 + $0x68] sm:$0xff] %vm51_vm0, %v809_v2  ;;  %v503_v46 = vmul.f32 %v923_v13, %v502_v56  ;;  %v483_v33 = vmul.f32 %v925_v49, %v482_v50  ;;  %v511_v30 = vmul.f32 0.5, %v510_v57  ;;  %vm536_vm13 = vmor %vm534_vm12, %vm535_vm10  ;;  %v765_v20 = vadd.f32 %v1638_v6, %v1636_v38 }
 0x191   :  { %v532_v18 = vsub.f32 1.5, %v531_v26  ;;  %v931_v47 = vpop.eup %930  ;;  %vm516_vm15 = vmor %vm514_vm14, %vm515_vm11  ;;  %vm544_vm2 = vweird.f32 %v1672_v12 }
 0x192   :  { %v507_v5 = vsel %vm506_vm7, %v923_v13, %v503_v46  ;;  %v487_v37 = vsel %vm486_vm9, %v925_v49, %v483_v33  ;;  %v512_v63 = vsub.f32 1.5, %v511_v30  ;;  %v539_v42 = vmul.f32 %v931_v47, %v1672_v12  ;;  %v773_v25 = vpop.f32.mrf.mxu3 }
 0x193   :  { %v787_v59 = vmul.f32 %v762_v23, %v507_v5  ;;  %v785_v0 = vmul.f32 %v756_v34, %v487_v37  ;;  %v533_v44 = vmul.f32 %v927_v24, %v532_v18  ;;  %vm545_vm1 = vweird.f32 %v931_v47 }
 0x194   :  { %v513_v10 = vmul.f32 %v929_v41, %v512_v63  ;;  %v540_v29 = vmul.f32 %v931_v47, %v539_v42  ;;  %v774_v52 = vadd.f32 %v773_v25, %v660_v62  ;;  %vm546_vm3 = vmor %vm544_vm2, %vm545_vm1 }
 0x195   :  { %v807_v17 = vadd.f32 %v1481_v22, %v787_v59  ;;  %v805_v36 = vadd.f32 %v1481_v22, %v785_v0  ;;  %v537_v19 = vsel %vm536_vm13, %v927_v24, %v533_v44 }
 0x196   :  { %v790_v31 = vmul.f32 %v771_v35, %v537_v19  ;;  %v517_v21 = vsel %vm516_vm15, %v929_v41, %v513_v10  ;;  %v541_v4 = vmul.f32 0.5, %v540_v29 }
 0x197   :  { %823 = vst.msk [vmem:[#allocation2 + $0x58] sm:$0xff] %vm51_vm0, %v807_v17  ;;  %v788_v1 = vmul.f32 %v765_v20, %v517_v21 }
 0x198   :  { %821 = vst.msk [vmem:[#allocation2 + $0x48] sm:$0xff] %vm51_vm0, %v805_v36  ;;  %v810_v3 = vadd.f32 %v1481_v22, %v790_v31  ;;  %v542_v38 = vsub.f32 1.5, %v541_v4 }
 0x199   :  { %v808_v13 = vadd.f32 %v1481_v22, %v788_v1 }
 0x19a   :  { %826 = vst.msk [vmem:[#allocation2 + $0x70] sm:$0xff] %vm51_vm0, %v810_v3  ;;  %v543_v6 = vmul.f32 %v931_v47, %v542_v38 }
 0x19b   :  { %824 = vst.msk [vmem:[#allocation2 + $0x60] sm:$0xff] %vm51_vm0, %v808_v13 }
 0x19c   :  { %v547_v15 = vsel %vm546_vm3, %v931_v47, %v543_v6 }
 0x19d   :  { %v791_v53 = vmul.f32 %v774_v52, %v547_v15 }
 0x19f   :  { %v811_v49 = vadd.f32 %v1481_v22, %v791_v53 }
 0x1a1   :  { %827 = vst.msk [vmem:[#allocation2 + $0x78] sm:$0xff] %vm51_vm0, %v811_v49 }
 0x1a2   :  { %840 = dma.vmem_to_hbm [thread:$0]  %s833_s3, 2048, %s835_s7, [#allocation3], %s959_s8, %s959_s8, %s960_s9  }
 0x1a3   :  { %956 = dma.done.wait [#allocation3], 2048  }
 0x1a4   :  { %957 = vsyncadd [#allocation3], 4294965248 }
 0x1a5   :  { %845 = vsyncpa [#allocation3], 1 }

</bundles_post_ra>
